<compile_context>
chip_gen: v6e
topology: v6e:2x2x1
jax: 0.10.0
libtpu: 0.0.40
codegen_flags: <defaults>
</compile_context>

<pallas_src>
import functools

import jax
import jax.numpy as jnp
import numpy as np
from jax import lax
from jax.experimental import pallas as pl
from jax.experimental.pallas import tpu as pltpu

EPS = 1e-12


def _round_up(x, m):
    return ((x + m - 1) // m) * m


def _pick_tile(total, want):
    """Largest divisor of `total` that is <= want and a multiple of 8 (or == total)."""
    want = max(1, min(want, total))
    for t in range(want, 0, -1):
        if total % t == 0 and (t % 8 == 0 or t == total):
            return t
    return total


def _layer_norm(x, gamma, beta, hidden, hidden_pad):
    """Row-wise LayerNorm in f32; padded columns (>= hidden) are masked out."""
    if hidden_pad != hidden:
        col = lax.broadcasted_iota(jnp.int32, x.shape, dimension=x.ndim - 1)
        keep = col < hidden
        x = jnp.where(keep, x, 0.0)
        u = jnp.sum(x, axis=-1, keepdims=True) * (1.0 / hidden)
        xc = jnp.where(keep, x - u, 0.0)
    else:
        u = jnp.mean(x, axis=-1, keepdims=True)
        xc = x - u
    var = jnp.sum(xc * xc, axis=-1, keepdims=True) * (1.0 / hidden)
    inv = lax.rsqrt(var + EPS)                      # EUP slot, off the VPU critical path
    return xc * (gamma * inv) + beta


# ---------------------------------------------------------------------------
# Path A: large vocab — word table stays in HBM, rows gathered via manual DMA.
# ---------------------------------------------------------------------------
def _embeddings_hbm_kernel(seq_len, seq_tile, chunk, hidden, hidden_pad,
                           ids_ref,      # SMEM scalar-prefetch, (B*S,) int32
                           wtab_ref,     # HBM (ANY), (V, H_pad) word table
                           ptab_ref,     # VMEM block, (seq_tile, H_pad)
                           gamma_ref,    # VMEM, (1, H_pad) f32
                           beta_ref,     # VMEM, (1, H_pad) f32
                           out_ref,      # VMEM block, (seq_tile, H_pad)
                           wbuf,         # VMEM scratch, (2, chunk, H_pad)
                           sem):         # DMA semaphores, (2,)
    s = pl.program_id(0)
    b = pl.program_id(1)
    base = b * seq_len + s * seq_tile
    n_chunks = seq_tile // chunk
    unroll = min(chunk, 8)

    def issue(chunk_start, slot):
        # Issue `chunk` row gathers, all signaling the same semaphore slot.
        def _row(r, carry):
            tok = ids_ref[base + chunk_start + r]
            pltpu.make_async_copy(wtab_ref.at[pl.ds(tok, 1), :],
                                  wbuf.at[slot, pl.ds(r, 1), :],
                                  sem.at[slot]).start()
            return carry
        lax.fori_loop(0, chunk, _row, 0, unroll=unroll)

    issue(0, 0)                                   # prime slot 0
    for c in range(n_chunks):                     # static, small
        slot = c & 1
        # One aggregate wait sized for the whole chunk (chunk * H_pad rows).
        pltpu.make_async_copy(wtab_ref.at[pl.ds(0, chunk), :],
                              wbuf.at[slot],
                              sem.at[slot]).wait()
        if c + 1 < n_chunks:                      # prefetch next chunk while computing
            issue((c + 1) * chunk, 1 - slot)
        r0 = c * chunk
        x = (wbuf[slot].astype(jnp.float32)
             + ptab_ref[pl.ds(r0, chunk), :].astype(jnp.float32))
        y = _layer_norm(x, gamma_ref[...], beta_ref[...], hidden, hidden_pad)
        out_ref[pl.ds(r0, chunk), :] = y.astype(out_ref.dtype)


# ---------------------------------------------------------------------------
# Path B: small vocab — word table is VMEM-resident, gather via pl.ds indexing.
# ---------------------------------------------------------------------------
def _embeddings_vmem_kernel(seq_len, seq_tile, hidden, hidden_pad,
                            ids_ref,      # SMEM scalar-prefetch, (B*S,) int32
                            wtab_ref,     # VMEM, (V_pad, H_pad) word table
                            ptab_ref,     # VMEM block, (seq_tile, H_pad)
                            gamma_ref,    # VMEM, (1, H_pad) f32
                            beta_ref,     # VMEM, (1, H_pad) f32
                            out_ref,      # VMEM block, (seq_tile, H_pad)
                            wbuf):        # VMEM scratch, (seq_tile, H_pad)
    s = pl.program_id(0)
    b = pl.program_id(1)
    base = b * seq_len + s * seq_tile

    def _row(r, carry):
        tok = ids_ref[base + r]
        wbuf[pl.ds(r, 1), :] = wtab_ref[pl.ds(tok, 1), :]
        return carry
    lax.fori_loop(0, seq_tile, _row, 0, unroll=min(seq_tile, 8))

    x = wbuf[...].astype(jnp.float32) + ptab_ref[...].astype(jnp.float32)
    y = _layer_norm(x, gamma_ref[...], beta_ref[...], hidden, hidden_pad)
    out_ref[...] = y.astype(out_ref.dtype)


def embeddings_forward(input_ids, word_emb, pos_emb, gamma, beta, *,
                       seq_tile=256, gather_chunk=128, out_dtype=jnp.float32,
                       use_vmem_table=None, vmem_table_budget=8 << 20):
    """input_ids: (B, S) int -> (B, S, H) out_dtype."""
    B, S = input_ids.shape
    V, H = word_emb.shape
    P = pos_emb.shape[0]
    assert S <= P, "sequence length exceeds max_position_size"

    seq_tile = _pick_tile(S, seq_tile)
    chunk = _pick_tile(seq_tile, gather_chunk)
    H_pad = _round_up(H, 128)
    tab_dtype = word_emb.dtype
    tab_itemsize = jnp.dtype(tab_dtype).itemsize

    if use_vmem_table is None:
        use_vmem_table = V * H_pad * tab_itemsize <= vmem_table_budget

    def _pad_cols(a):
        if H_pad != H:
            a = jnp.pad(a, [(0, 0)] * (a.ndim - 1) + [(0, H_pad - H)])
        return a

    word_p = _pad_cols(word_emb)
    V_pad = V
    if use_vmem_table:
        V_pad = _round_up(V, 8)
        if V_pad != V:
            word_p = jnp.pad(word_p, [(0, V_pad - V), (0, 0)])
    pos_p = _pad_cols(pos_emb[:S])
    gamma2d = _pad_cols(gamma.reshape(1, H).astype(jnp.float32))
    beta2d = _pad_cols(beta.reshape(1, H).astype(jnp.float32))
    # Clip ids so an out-of-range / padding token can never drive an OOB row DMA.
    ids_flat = jnp.clip(input_ids.reshape(B * S).astype(jnp.int32), 0, V - 1)

    # s outermost, b innermost: the pos-table block index (s, 0) is constant
    # across the inner batch loop, so Pallas skips re-DMAing it per batch.
    grid = (S // seq_tile, B)

    common_in_specs = [
        pl.BlockSpec((seq_tile, H_pad), lambda s, b, ids: (s, 0)),   # pos table
        pl.BlockSpec((1, H_pad), lambda s, b, ids: (0, 0)),          # gamma
        pl.BlockSpec((1, H_pad), lambda s, b, ids: (0, 0)),          # beta
    ]
    out_spec = pl.BlockSpec((None, seq_tile, H_pad), lambda s, b, ids: (b, s, 0))

    tile_elems = seq_tile * H_pad
    out_itemsize = jnp.dtype(out_dtype).itemsize
    vmem_est = (2 * tile_elems * tab_itemsize       # pos blocks (double-buffered)
                + 2 * tile_elems * out_itemsize     # out blocks (double-buffered)
                + 6 * tile_elems * 4)               # f32 LN intermediates headroom
    if use_vmem_table:
        vmem_est += 2 * V_pad * H_pad * tab_itemsize + tile_elems * tab_itemsize
        kernel = functools.partial(_embeddings_vmem_kernel, S, seq_tile, H, H_pad)
        in_specs = [pl.BlockSpec((V_pad, H_pad), lambda s, b, ids: (0, 0))] \
            + common_in_specs
        scratch = [pltpu.VMEM((seq_tile, H_pad), tab_dtype)]
    else:
        vmem_est += 2 * chunk * H_pad * tab_itemsize
        kernel = functools.partial(_embeddings_hbm_kernel, S, seq_tile, chunk, H, H_pad)
        in_specs = [pl.BlockSpec(memory_space=pl.ANY)] + common_in_specs
        scratch = [pltpu.VMEM((2, chunk, H_pad), tab_dtype),
                   pltpu.SemaphoreType.DMA((2,))]
    vmem_limit = int(min(64 << 20, max(32 << 20, 2 * vmem_est)))

    out = pl.pallas_call(
        kernel,
        out_shape=jax.ShapeDtypeStruct((B, S, H_pad), out_dtype),
        grid_spec=pltpu.PrefetchScalarGridSpec(
            num_scalar_prefetch=1,                 # ids -> SMEM
            grid=grid,
            in_specs=in_specs,
            out_specs=out_spec,
            scratch_shapes=scratch,
        ),
        compiler_params=pltpu.CompilerParams(
            dimension_semantics=("parallel", "parallel"),
            vmem_limit_bytes=vmem_limit),
    )(ids_flat, word_p, pos_p, gamma2d, beta2d)

    if H_pad != H:
        out = out[:, :, :H]
    return out


def embeddings_reference(input_ids, word_emb, pos_emb, gamma, beta):
    """Plain-JAX reference matching the PyTorch forward (dropout in eval)."""
    B, S = input_ids.shape
    position_ids = jnp.broadcast_to(jnp.arange(S), (B, S))
    we = word_emb[input_ids].astype(jnp.float32)
    pe = pos_emb[position_ids].astype(jnp.float32)
    x = we + pe
    u = jnp.mean(x, axis=-1, keepdims=True)
    s = jnp.mean((x - u) ** 2, axis=-1, keepdims=True)
    xn = (x - u) / jnp.sqrt(s + EPS)
    return gamma * xn + beta


if __name__ == "__main__":
    # Module hyperparameters (small, consistent with the forward pass).
    vocab_size = 20
    hidden_size = 32
    max_position_size = 16
    # dropout_rate = 0.1  (identity in eval mode)

    B, S = 2, 8

    key = jax.random.PRNGKey(0)
    k_ids, k_w, k_p = jax.random.split(key, 3)

    input_ids = jax.random.randint(k_ids, (B, S), 0, vocab_size, dtype=jnp.int32)
    word_emb = jax.random.normal(k_w, (vocab_size, hidden_size), dtype=jnp.float32)
    pos_emb = jax.random.normal(k_p, (max_position_size, hidden_size),
                                dtype=jnp.float32)
    gamma = jnp.ones((hidden_size,), dtype=jnp.float32)
    beta = jnp.zeros((hidden_size,), dtype=jnp.float32)

    ref = embeddings_reference(input_ids, word_emb, pos_emb, gamma, beta)

    # Fast path (small vocab -> VMEM-resident table, auto-selected).
    out_fast = embeddings_forward(input_ids, word_emb, pos_emb, gamma, beta)
    out_fast = jax.block_until_ready(out_fast)
    np.testing.assert_allclose(np.asarray(out_fast), np.asarray(ref),
                               rtol=1e-5, atol=1e-5)

    # General path (HBM-resident table + manual DMA row gather), forced.
    out_hbm = embeddings_forward(input_ids, word_emb, pos_emb, gamma, beta,
                                 use_vmem_table=False)
    out_hbm = jax.block_until_ready(out_hbm)
    np.testing.assert_allclose(np.asarray(out_hbm), np.asarray(ref),
                               rtol=1e-5, atol=1e-5)

    print("KERNEL_OK")
</pallas_src>

<mosaic_0001>
module attributes {stable_mosaic.version = 11 : i64} {
  func.func @_embeddings_vmem_kernel(%arg0: i32, %arg1: i32, %arg2: memref<16xi32, #tpu.memory_space<smem>>, %arg3: memref<24x128xf32, #tpu.memory_space<vmem>>, %arg4: memref<8x128xf32, #tpu.memory_space<vmem>>, %arg5: memref<1x128xf32, #tpu.memory_space<vmem>>, %arg6: memref<1x128xf32, #tpu.memory_space<vmem>>, %arg7: memref<1x8x128xf32, #tpu.memory_space<vmem>>, %arg8: memref<8x128xf32, #tpu.memory_space<vmem>>) attributes {dimension_semantics = [#tpu.dimension_semantics<parallel>, #tpu.dimension_semantics<parallel>], iteration_bounds = array<i64: 1, 2>, scalar_prefetch = 1 : i64, scratch_operands = 1 : i64, tpu.core_type = #tpu.core_type<tc>, window_params = [{pipeline_mode = #tpu.pipeline_mode<synchronous>, transform_indices = @transform_0, window_bounds = array<i64: 24, 128>}, {transform_indices = @transform_1, window_bounds = array<i64: 8, 128>}, {pipeline_mode = #tpu.pipeline_mode<synchronous>, transform_indices = @transform_2, window_bounds = array<i64: 1, 128>}, {pipeline_mode = #tpu.pipeline_mode<synchronous>, transform_indices = @transform_3, window_bounds = array<i64: 1, 128>}, {transform_indices = @transform_4, window_bounds = array<i64: 1, 8, 128>}]} {
    %c8_i32 = arith.constant 8 : i32
    %0 = arith.muli %arg1, %c8_i32 : i32
    %c8_i32_0 = arith.constant 8 : i32
    %1 = arith.muli %arg0, %c8_i32_0 : i32
    %2 = arith.addi %0, %1 : i32
    %c0_i32 = arith.constant 0 : i32
    %3 = arith.addi %2, %c0_i32 : i32
    %4 = arith.index_cast %3 : i32 to index
    %5 = memref.load %arg2[%4] : memref<16xi32, #tpu.memory_space<smem>>
    %6 = arith.index_cast %5 : i32 to index
    %c0 = arith.constant 0 : index
    %7 = vector.load %arg3[%6, %c0] : memref<24x128xf32, #tpu.memory_space<vmem>>, vector<1x128xf32>
    %8 = arith.index_cast %c0_i32 : i32 to index
    %c0_1 = arith.constant 0 : index
    %9 = vector.load %arg8[%8, %c0_1] : memref<8x128xf32, #tpu.memory_space<vmem>>, vector<1x128xf32>
    tpu.vector_store %arg8[%8, %c0_1], %7 {strides = array<i32>} : memref<8x128xf32, #tpu.memory_space<vmem>>, vector<1x128xf32>,
    %c1_i32 = arith.constant 1 : i32
    %10 = arith.addi %2, %c1_i32 : i32
    %11 = arith.index_cast %10 : i32 to index
    %12 = memref.load %arg2[%11] : memref<16xi32, #tpu.memory_space<smem>>
    %13 = arith.index_cast %12 : i32 to index
    %c0_2 = arith.constant 0 : index
    %14 = vector.load %arg3[%13, %c0_2] : memref<24x128xf32, #tpu.memory_space<vmem>>, vector<1x128xf32>
    %15 = arith.index_cast %c1_i32 : i32 to index
    %c0_3 = arith.constant 0 : index
    %16 = vector.load %arg8[%15, %c0_3] : memref<8x128xf32, #tpu.memory_space<vmem>>, vector<1x128xf32>
    tpu.vector_store %arg8[%15, %c0_3], %14 {strides = array<i32>} : memref<8x128xf32, #tpu.memory_space<vmem>>, vector<1x128xf32>,
    %c2_i32 = arith.constant 2 : i32
    %17 = arith.addi %2, %c2_i32 : i32
    %18 = arith.index_cast %17 : i32 to index
    %19 = memref.load %arg2[%18] : memref<16xi32, #tpu.memory_space<smem>>
    %20 = arith.index_cast %19 : i32 to index
    %c0_4 = arith.constant 0 : index
    %21 = vector.load %arg3[%20, %c0_4] : memref<24x128xf32, #tpu.memory_space<vmem>>, vector<1x128xf32>
    %22 = arith.index_cast %c2_i32 : i32 to index
    %c0_5 = arith.constant 0 : index
    %23 = vector.load %arg8[%22, %c0_5] : memref<8x128xf32, #tpu.memory_space<vmem>>, vector<1x128xf32>
    tpu.vector_store %arg8[%22, %c0_5], %21 {strides = array<i32>} : memref<8x128xf32, #tpu.memory_space<vmem>>, vector<1x128xf32>,
    %c3_i32 = arith.constant 3 : i32
    %24 = arith.addi %2, %c3_i32 : i32
    %25 = arith.index_cast %24 : i32 to index
    %26 = memref.load %arg2[%25] : memref<16xi32, #tpu.memory_space<smem>>
    %27 = arith.index_cast %26 : i32 to index
    %c0_6 = arith.constant 0 : index
    %28 = vector.load %arg3[%27, %c0_6] : memref<24x128xf32, #tpu.memory_space<vmem>>, vector<1x128xf32>
    %29 = arith.index_cast %c3_i32 : i32 to index
    %c0_7 = arith.constant 0 : index
    %30 = vector.load %arg8[%29, %c0_7] : memref<8x128xf32, #tpu.memory_space<vmem>>, vector<1x128xf32>
    tpu.vector_store %arg8[%29, %c0_7], %28 {strides = array<i32>} : memref<8x128xf32, #tpu.memory_space<vmem>>, vector<1x128xf32>,
    %c4_i32 = arith.constant 4 : i32
    %31 = arith.addi %2, %c4_i32 : i32
    %32 = arith.index_cast %31 : i32 to index
    %33 = memref.load %arg2[%32] : memref<16xi32, #tpu.memory_space<smem>>
    %34 = arith.index_cast %33 : i32 to index
    %c0_8 = arith.constant 0 : index
    %35 = vector.load %arg3[%34, %c0_8] : memref<24x128xf32, #tpu.memory_space<vmem>>, vector<1x128xf32>
    %36 = arith.index_cast %c4_i32 : i32 to index
    %c0_9 = arith.constant 0 : index
    %37 = vector.load %arg8[%36, %c0_9] : memref<8x128xf32, #tpu.memory_space<vmem>>, vector<1x128xf32>
    tpu.vector_store %arg8[%36, %c0_9], %35 {strides = array<i32>} : memref<8x128xf32, #tpu.memory_space<vmem>>, vector<1x128xf32>,
    %c5_i32 = arith.constant 5 : i32
    %38 = arith.addi %2, %c5_i32 : i32
    %39 = arith.index_cast %38 : i32 to index
    %40 = memref.load %arg2[%39] : memref<16xi32, #tpu.memory_space<smem>>
    %41 = arith.index_cast %40 : i32 to index
    %c0_10 = arith.constant 0 : index
    %42 = vector.load %arg3[%41, %c0_10] : memref<24x128xf32, #tpu.memory_space<vmem>>, vector<1x128xf32>
    %43 = arith.index_cast %c5_i32 : i32 to index
    %c0_11 = arith.constant 0 : index
    %44 = vector.load %arg8[%43, %c0_11] : memref<8x128xf32, #tpu.memory_space<vmem>>, vector<1x128xf32>
    tpu.vector_store %arg8[%43, %c0_11], %42 {strides = array<i32>} : memref<8x128xf32, #tpu.memory_space<vmem>>, vector<1x128xf32>,
    %c6_i32 = arith.constant 6 : i32
    %45 = arith.addi %2, %c6_i32 : i32
    %46 = arith.index_cast %45 : i32 to index
    %47 = memref.load %arg2[%46] : memref<16xi32, #tpu.memory_space<smem>>
    %48 = arith.index_cast %47 : i32 to index
    %c0_12 = arith.constant 0 : index
    %49 = vector.load %arg3[%48, %c0_12] : memref<24x128xf32, #tpu.memory_space<vmem>>, vector<1x128xf32>
    %50 = arith.index_cast %c6_i32 : i32 to index
    %c0_13 = arith.constant 0 : index
    %51 = vector.load %arg8[%50, %c0_13] : memref<8x128xf32, #tpu.memory_space<vmem>>, vector<1x128xf32>
    tpu.vector_store %arg8[%50, %c0_13], %49 {strides = array<i32>} : memref<8x128xf32, #tpu.memory_space<vmem>>, vector<1x128xf32>,
    %c7_i32 = arith.constant 7 : i32
    %52 = arith.addi %2, %c7_i32 : i32
    %53 = arith.index_cast %52 : i32 to index
    %54 = memref.load %arg2[%53] : memref<16xi32, #tpu.memory_space<smem>>
    %55 = arith.index_cast %54 : i32 to index
    %c0_14 = arith.constant 0 : index
    %56 = vector.load %arg3[%55, %c0_14] : memref<24x128xf32, #tpu.memory_space<vmem>>, vector<1x128xf32>
    %57 = arith.index_cast %c7_i32 : i32 to index
    %c0_15 = arith.constant 0 : index
    %58 = vector.load %arg8[%57, %c0_15] : memref<8x128xf32, #tpu.memory_space<vmem>>, vector<1x128xf32>
    tpu.vector_store %arg8[%57, %c0_15], %56 {strides = array<i32>} : memref<8x128xf32, #tpu.memory_space<vmem>>, vector<1x128xf32>,
    %c8_i32_16 = arith.constant 8 : i32
    %c0_17 = arith.constant 0 : index
    %c0_18 = arith.constant 0 : index
    %59 = vector.load %arg8[%c0_17, %c0_18] : memref<8x128xf32, #tpu.memory_space<vmem>>, vector<8x128xf32>
    %c0_19 = arith.constant 0 : index
    %c0_20 = arith.constant 0 : index
    %60 = vector.load %arg4[%c0_19, %c0_20] : memref<8x128xf32, #tpu.memory_space<vmem>>, vector<8x128xf32>
    %61 = arith.addf %59, %60 : vector<8x128xf32>
    %c0_21 = arith.constant 0 : index
    %c0_22 = arith.constant 0 : index
    %62 = vector.load %arg5[%c0_21, %c0_22] : memref<1x128xf32, #tpu.memory_space<vmem>>, vector<1x128xf32>
    %c0_23 = arith.constant 0 : index
    %c0_24 = arith.constant 0 : index
    %63 = vector.load %arg6[%c0_23, %c0_24] : memref<1x128xf32, #tpu.memory_space<vmem>>, vector<1x128xf32>
    %64 = tpu.iota {dimensions = array<i32: 1>} : vector<8x128xi32>
    %c32_i32 = arith.constant 32 : i32
    %65 = vector.broadcast %c32_i32 : i32 to vector<8x128xi32>
    %66 = arith.cmpi slt, %64, %65 : vector<8x128xi32>
    %cst = arith.constant 0.000000e+00 : f32
    %67 = vector.broadcast %cst : f32 to vector<8x128xf32>
    %68 = arith.select %66, %61, %67 : vector<8x128xi1>, vector<8x128xf32>
    %cst_25 = arith.constant dense<0.000000e+00> : vector<8xf32>
    %69 = vector.multi_reduction <add>, %68, %cst_25 [1] : vector<8x128xf32> to vector<8xf32>
    %70 = vector.shape_cast %69 : vector<8xf32> to vector<8x1xf32>
    %cst_26 = arith.constant 3.125000e-02 : f32
    %71 = vector.broadcast %cst_26 : f32 to vector<8x1xf32>
    %72 = arith.mulf %70, %71 : vector<8x1xf32>
    %73 = vector.broadcast %72 : vector<8x1xf32> to vector<8x128xf32>
    %74 = arith.subf %68, %73 : vector<8x128xf32>
    %cst_27 = arith.constant 0.000000e+00 : f32
    %75 = vector.broadcast %cst_27 : f32 to vector<8x128xf32>
    %76 = arith.select %66, %74, %75 : vector<8x128xi1>, vector<8x128xf32>
    %77 = arith.mulf %76, %76 : vector<8x128xf32>
    %cst_28 = arith.constant dense<0.000000e+00> : vector<8xf32>
    %78 = vector.multi_reduction <add>, %77, %cst_28 [1] : vector<8x128xf32> to vector<8xf32>
    %79 = vector.shape_cast %78 : vector<8xf32> to vector<8x1xf32>
    %cst_29 = arith.constant 3.125000e-02 : f32
    %80 = vector.broadcast %cst_29 : f32 to vector<8x1xf32>
    %81 = arith.mulf %79, %80 : vector<8x1xf32>
    %cst_30 = arith.constant 9.99999996E-13 : f32
    %82 = vector.broadcast %cst_30 : f32 to vector<8x1xf32>
    %83 = arith.addf %81, %82 : vector<8x1xf32>
    %84 = math.rsqrt %83 : vector<8x1xf32>
    %85 = vector.broadcast %62 : vector<1x128xf32> to vector<8x128xf32>
    %86 = vector.broadcast %84 : vector<8x1xf32> to vector<8x128xf32>
    %87 = arith.mulf %85, %86 : vector<8x128xf32>
    %88 = arith.mulf %76, %87 : vector<8x128xf32>
    %89 = vector.broadcast %63 : vector<1x128xf32> to vector<8x128xf32>
    %90 = arith.addf %88, %89 : vector<8x128xf32>
    %c0_31 = arith.constant 0 : index
    %c0_32 = arith.constant 0 : index
    %c0_33 = arith.constant 0 : index
    %91 = vector.load %arg7[%c0_31, %c0_32, %c0_33] : memref<1x8x128xf32, #tpu.memory_space<vmem>>, vector<1x8x128xf32>
    %92 = vector.shape_cast %91 : vector<1x8x128xf32> to vector<8x128xf32>
    %93 = vector.shape_cast %90 : vector<8x128xf32> to vector<1x8x128xf32>
    tpu.vector_store %arg7[%c0_31, %c0_32, %c0_33], %93 {strides = array<i32>} : memref<1x8x128xf32, #tpu.memory_space<vmem>>, vector<1x8x128xf32>,
    return
  }
  func.func @transform_0(%arg0: i32, %arg1: i32, %arg2: memref<16xi32, #tpu.memory_space<smem>>) -> (i32, i32) {
    %c0_i32 = arith.constant 0 : i32
    %c0_i32_0 = arith.constant 0 : i32
    %c0_i32_1 = arith.constant 0 : i32
    return %c0_i32, %c0_i32_0 : i32, i32
  }
  func.func @transform_1(%arg0: i32, %arg1: i32, %arg2: memref<16xi32, #tpu.memory_space<smem>>) -> (i32, i32) {
    %c0_i32 = arith.constant 0 : i32
    %c0_i32_0 = arith.constant 0 : i32
    return %arg0, %c0_i32 : i32, i32
  }
  func.func @transform_2(%arg0: i32, %arg1: i32, %arg2: memref<16xi32, #tpu.memory_space<smem>>) -> (i32, i32) {
    %c0_i32 = arith.constant 0 : i32
    %c0_i32_0 = arith.constant 0 : i32
    %c0_i32_1 = arith.constant 0 : i32
    return %c0_i32, %c0_i32_0 : i32, i32
  }
  func.func @transform_3(%arg0: i32, %arg1: i32, %arg2: memref<16xi32, #tpu.memory_space<smem>>) -> (i32, i32) {
    %c0_i32 = arith.constant 0 : i32
    %c0_i32_0 = arith.constant 0 : i32
    %c0_i32_1 = arith.constant 0 : i32
    return %c0_i32, %c0_i32_0 : i32, i32
  }
  func.func @transform_4(%arg0: i32, %arg1: i32, %arg2: memref<16xi32, #tpu.memory_space<smem>>) -> (i32, i32, i32) {
    %c0_i32 = arith.constant 0 : i32
    %c0_i32_0 = arith.constant 0 : i32
    return %arg1, %arg0, %c0_i32 : i32, i32, i32
  }
}

</mosaic_0001>

<bundles_post_ra>
// kernel: tpu_custom_call.1
= control target key start
LH: loop header
LB: loop body
LE: loop exit
PB: predicated region body
PF: predicated region fallthrough
CT: control target
= control target key end

     0   :  { %s656_s18 = smov [#allocation4]   ;;  %s840_s0 = inlined_call_operand.hbm [shape: s32[16], index: 0, kind: input, shape index: {}]   ;;  %s841_s1 = inlined_call_operand.hbm [shape: f32[24,128], index: 1, kind: input, shape index: {}]   ;;  %s842_s2 = inlined_call_operand.hbm [shape: f32[8,128], index: 2, kind: input, shape index: {}]   ;;  %s843_s3 = inlined_call_operand.vmem [shape: f32[1,128], index: 3, kind: input, shape index: {}]   ;;  %s844_s4 = inlined_call_operand.vmem [shape: f32[1,128], index: 4, kind: input, shape index: {}]   ;;  %s845_s5 = inlined_call_operand.hbm [shape: f32[2,8,128], index: 5, kind: output, shape index: {}]  }
   0x1   :  { %848 = sst [smem:[#allocation16_spill]] %s841_s1 }
   0x2   :  { %849 = sst [smem:[#allocation17_spill]] %s842_s2 }
   0x3   :  { %11 = dma.hbm_to_smem %s840_s0, 16, %s656_s18, [#allocation3] }
   0x4   :  { %618 = dma.done.wait [#allocation3], 16 }
   0x5   :  { %619 = vsyncadd [#allocation3], 4294967280 }
   0x6   :  { %13 = sfence }
   0x7   :  { %14 = vsyncpa [#allocation6], 0 }
   0x8   :  { %15 = vsyncpa [#allocation9], 0 }
   0x9   :  { %16 = vsyncpa [#allocation7], 0 }
   0xa   :  { %18 = vsyncpa [#allocation7 + $0x1], 0  ;;  %s695_s21 = smov 0   ;;  %s697_s22 = smov 0  }
   0xb   :  { %s699_s23 = smov 0   ;;  %s701_s24 = smov 0  }
   0xc   :  { %s703_s25 = smov 0   ;;  %s705_s26 = smov 0  }
   0xd LB: > { %s411_s0 = sadd.s32 4294967295, %s654_s26   ;;  %s412_s27 = sadd.s32 4294967294, %s654_s26   ;;  %s654_s26 = sphi %s705_s26, %s24_s26   ;;  %s650_s25 = sphi %s703_s25, %s865_s25   ;;  %s646_s24 = sphi %s701_s24, %s864_s24   ;;  %s642_s23 = sphi %s699_s23, %s863_s23   ;;  %s638_s22 = sphi %s697_s22, %s862_s22   ;;  %s634_s21 = sphi %s695_s21, %s861_s21  }
   0xe   : > { %s33_s28 = sadd.s32 1, %s650_s25  ;;  %s134_s29 = sadd.s32 1, %s642_s23 }
   0xf   : > { %p34_p0 = scmp.ge.s32.totalorder %s33_s28, 2  ;;  %p144_p1 = scmp.ne.s32.totalorder %s642_s23, %s638_s22 }
  0x10   : > { %p145_p2 = scmp.eq.s32.totalorder %s411_s0, 1  ;;  %p150_p3 = scmp.ne.s32.totalorder %s638_s22, %s634_s21 }
  0x11   : > { %s867_s28 = smov (%p34_p0, %s33_s28), 0  ;;  %p151_p5 = scmp.eq.s32.totalorder %s412_s27, 1 }
  0x12   : > { %850 = sst [smem:[#allocation15_spill]] %s867_s28  ;;  %p735_p4 = por %p145_p2, %p144_p1 }
  0x13   : > { %s129_s6 = ssub.s32 %s650_s25, %s867_s28  ;;  %p413_p6 = scmp.ge.s32.totalorder %s654_s26, 1 }
  0x14   : > { %s851_s30 = scalar_select %p735_p4, 1, 0 }
  0x15   : > { %p132_p7 = scmp.eq.s32.totalorder %s129_s6, 0  ;;  %p742_p8 = por %p151_p5, %p150_p3 }
  0x16   : > { %p158_p9 = scmp.lt.s32.totalorder %s654_s26, 3  ;;  %p754_p11 = scmp.eq.s32.totalorder %s411_s0, 0 }
  0x17   : > { %s852_s7 = scalar_select %p742_p8, 1, 0 }
  0x18   : > { %s748_s8 = scalar_select %p132_p7, %s642_s23, %s134_s29  }
  0x19   : > { %p750_p10 = pnand %p413_p6, %p158_p9  ;;  %s657_s11 = smov [#allocation5]  }
  0x1a   : > { %s170_s12 = sshll.u32 %s657_s11, 4  ;;  %s658_s14 = smov [#allocation8]   ;;  %s171_s12 = int_to_ptr.vmem [resolvable:$true] %s170_s12 }
  0x1b   : > { %p437_p12 = pneg %p750_p10  ;;  %s186_s15 = sshll.u32 %s658_s14, 4  ;;  %s187_s15 = int_to_ptr.vmem [resolvable:$true] %s186_s15 }
  0x1c   : > { %s527_s16 = scalar_lea.vmem %s171_s12, 384  ;;  %p535_p5 = scmp.lt.s32.totalorder %s171_s12, %s171_s12 }
  0x1d   : > { %p762_p13 = pnand %p754_p11, %p437_p12  ;;  %p528_p1 = scmp.ne.s32.totalorder %s171_s12, %s527_s16 }
  0x1e   : > { %p536_p6 = scmp.lt.s32.totalorder %s527_s16, %s527_s16 }
  0x1f   : > { %p518_p0 = pneg %p762_p13 }
  0x20   : > { %p537_p7 = por %p536_p6, %p535_p5 }
  0x21   : > { %p530_p2 = pnand %p528_p1, %p518_p0 }
  0x23   : > { %p531_p3 = pneg %p530_p2 }
  0x25   : > { %p538_p9 = pnand %p537_p7, %p531_p3 }
  0x27   : > { %541 = shalt.err (!%p538_p9)
}
  0x28   : > { %s659_s17 = smov 128   ;;  %s660_s18 = smov 8  }
  0x29   : > { %s856_s1 = sld [smem:[#allocation16_spill]]  ;;  %s553_s0 = scalar_lea.vmem %s187_s15, 128 }
  0x2a   : > { %p554_p12 = scmp.ne.s32.totalorder %s187_s15, %s553_s0  ;;  %p561_p8 = scmp.lt.s32.totalorder %s187_s15, %s187_s15 }
  0x2b   : > { %p562_p4 = scmp.lt.s32.totalorder %s553_s0, %s553_s0 }
  0x2c   : > { %p556_p1 = pnand %p554_p12, %p518_p0 }
  0x2d   : > { %p563_p5 = por %p562_p4, %p561_p8 }
  0x2e   : > { %p557_p2 = pneg %p556_p1 }
  0x2f   : > { %440 = dma.hbm_to_vmem [thread:$0]  (!%p762_p13), %s856_s1, 384, %s171_s12, [#allocation6], %s659_s17, %s659_s17, %s660_s18  }
  0x30   : > { %p564_p3 = pnand %p563_p5, %p557_p2 }
  0x32   : > { %567 = shalt.err (!%p564_p3)
}
  0x33   : > { %s857_s2 = sld [smem:[#allocation17_spill]] }
  0x35   : > { %205 = sbr.rel (%p750_p10) target bundleno = 409 (0x199), region = 36 }
  0x39   : > { %443 = dma.hbm_to_vmem [thread:$0]  (!%p762_p13), %s857_s2, 128, %s187_s15, [#allocation9]  }
  0x3a   : > { %621 = dma.done.wait (%p754_p11), [#allocation6], 384  }
  0x3b   : > { %623 = vsyncadd (%p754_p11), [#allocation6], 4294966912 }
  0x3c   : > { %625 = dma.done.wait (%p754_p11), [#allocation9], 128  }
  0x3d   : > { %627 = vsyncadd (%p754_p11), [#allocation9], 4294967168  ;;  %s420_s6 = sshll.u32 %s646_s24, 3  ;;  %v277_v8 = vlaneseq  ;;  %v273_v10 = vld [vmem:[#allocation8] sm:$0xff]  ;;  %p858_p8 = scmp.ne.s32.totalorder %s851_s30, 0 }
  0x3e   : > { %s233_s11 = sld [smem:[#allocation4 + %s420_s6]]  ;;  %s237_s12 = sadd.s32 1, %s420_s6  ;;  %v421_v22 = vld [vmem:[%s843_s3] ss:$0 sm:$0xff] }
  0x3f   : > { %s238_s13 = sld [smem:[#allocation4 + %s237_s12]]  ;;  %s242_s14 = sadd.s32 2, %s420_s6  ;;  %v278_v9 = vand.u32 127, %v277_v8  ;;  %v422_v25 = vld [vmem:[%s844_s4] ss:$0 sm:$0xff] }
  0x40   : > { %s243_s9 = sld [smem:[#allocation4 + %s242_s14]]  ;;  %s247_s15 = sadd.s32 3, %s420_s6 }
  0x41   : > { %s248_s16 = sld [smem:[#allocation4 + %s247_s15]]  ;;  %s252_s17 = sadd.s32 4, %s420_s6  ;;  %vm279_vm0 = vcmp.lt.s32.totalorder %v278_v9, 32 }
  0x42   : > { %s253_s18 = sld [smem:[#allocation4 + %s252_s17]]  ;;  %s257_s19 = sadd.s32 5, %s420_s6 }
  0x43   : > { %s258_s20 = sld [smem:[#allocation4 + %s257_s19]]  ;;  %s262_s0 = sadd.s32 6, %s420_s6 }
  0x44   : > { %s263_s27 = sld [smem:[#allocation4 + %s262_s0]]  ;;  %s234_s29 = scalar_lea.vmem [#allocation5], %s233_s11 }
  0x45   : > { %v235_v0 = vld [vmem:[%s234_s29] sm:$0x1]  ;;  %s267_s1 = sadd.s32 7, %s420_s6  ;;  %s239_s10 = scalar_lea.vmem [#allocation5], %s238_s13 }
  0x46   : > { %236 = vst [vmem:[#allocation2] sm:$0x1] %v235_v0  ;;  %v240_v1 = vld [vmem:[%s239_s10] sm:$0x1]  ;;  %s268_s2 = sld [smem:[#allocation4 + %s267_s1]]  ;;  %s244_s28 = scalar_lea.vmem [#allocation5], %s243_s9 }
  0x47   : > { %241 = vst [vmem:[#allocation2 + $0x1] sm:$0x1] %v240_v1  ;;  %v245_v2 = vld [vmem:[%s244_s28] sm:$0x1]  ;;  %s249_s12 = scalar_lea.vmem [#allocation5], %s248_s16  ;;  %s227_s1 = sand.u32 1, %s638_s22  }
  0x48   : > { %246 = vst [vmem:[#allocation2 + $0x2] sm:$0x1] %v245_v2  ;;  %v250_v3 = vld [vmem:[%s249_s12] sm:$0x1]  ;;  %s254_s14 = scalar_lea.vmem [#allocation5], %s253_s18  ;;  %s424_s17 = sshll.u32 %s646_s24, 7 }
  0x49   : > { %251 = vst [vmem:[#allocation2 + $0x3] sm:$0x1] %v250_v3  ;;  %v255_v4 = vld [vmem:[%s254_s14] sm:$0x1]  ;;  %s259_s15 = scalar_lea.vmem [#allocation5], %s258_s20  ;;  %s309_s29 = scalar_lea.sflag [#allocation7], %s227_s1 }
  0x4a   : > { %256 = vst [vmem:[#allocation2 + $0x4] sm:$0x1] %v255_v4  ;;  %v260_v5 = vld [vmem:[%s259_s15] sm:$0x1]  ;;  %s264_s11 = scalar_lea.vmem [#allocation5], %s263_s27  ;;  %s321_s27 = scalar_lea.hbm %s845_s5, %s424_s17 }
  0x4b   : > { %261 = vst [vmem:[#allocation2 + $0x5] sm:$0x1] %v260_v5  ;;  %v265_v6 = vld [vmem:[%s264_s11] sm:$0x1]  ;;  %s661_s12 = smov [#allocation10]  }
  0x4c   : > { %266 = vst [vmem:[#allocation2 + $0x6] sm:$0x1] %v265_v6  ;;  %s269_s6 = scalar_lea.vmem [#allocation5], %s268_s2  ;;  %s419_s2 = sshll.u32 %s227_s1, 3 }
  0x4d   : > { %v270_v7 = vld [vmem:[%s269_s6] sm:$0x1]  ;;  %s229_s18 = scalar_lea.vmem [#allocation10], %s419_s2  ;;  %s572_s14 = sshll.u32 %s661_s12, 4  ;;  %s573_s14 = int_to_ptr.vmem [resolvable:$false] %s572_s14 }
  0x4e   : > { %271 = vst [vmem:[#allocation2 + $0x7] sm:$0x1] %v270_v7  ;;  %s323_s19 = sshll.u32 %s229_s18, 4  ;;  %s574_s24 = scalar_lea.vmem %s573_s14, 256  ;;  %s324_s19 = int_to_ptr.vmem [resolvable:$true] %s323_s19 }
  0x4f   : > { %s568_s10 = scalar_lea.vmem %s324_s19, 128  ;;  %p575_p13 = scmp.lt.s32.totalorder %s324_s19, %s573_s14 }
  0x50   : > { %p569_p4 = scmp.ne.s32.totalorder %s324_s19, %s568_s10  ;;  %p576_p0 = scmp.lt.s32.totalorder %s574_s24, %s568_s10 }
  0x52   : > { %p570_p10 = pnand %p569_p4, %p858_p8  ;;  %p577_p6 = por %p576_p0, %p575_p13 }
  0x54   : > { %p571_p11 = pneg %p570_p10 }
  0x55   : > { %v272_v11 = vld [vmem:[#allocation2] sm:$0xff] }
  0x56   : > { %v274_v12 = vadd.f32 %v273_v10, %v272_v11  ;;  %p578_p7 = pnand %p577_p6, %p571_p11 }
  0x58   : > { %v280_v13 = vsel %vm279_vm0, %v274_v12, 0.0 }
  0x59   : > { %281 = vadd.xlane.f32.xlu0 %v280_v13 }
  0xe2   : > { %v282_v14 = vpop.xlane.xlu0 %281 }
  0xe3   : > { %v283_v15 = vmul.f32 0.03125, %v282_v14 }
  0xe5   : > { %v284_v16 = vsub.f32 %v280_v13, %v283_v15 }
  0xe7   : > { %v285_v17 = vsel %vm279_vm0, %v284_v16, 0.0 }
  0xe8   : > { %v286_v18 = vmul.f32 %v285_v17, %v285_v17 }
  0xea   : > { %287 = vadd.xlane.f32.xlu0 %v286_v18 }
 0x173   : > { %v288_v19 = vpop.xlane.xlu0 %287 }
 0x174   : > { %v289_v20 = vmul.f32 0.03125, %v288_v19 }
 0x176   : > { %v290_v21 = vadd.f32 1e-12, %v289_v20 }
 0x178   : > { %506 = vrsqrt.f32 %v290_v21 }
 0x185   : > { %v507_v23 = vpop.eup %506 }
 0x186   : > { %v298_v24 = vmul.f32 %v507_v23, %v421_v22 }
 0x188   : > { %v299_v26 = vmul.f32 %v298_v24, %v285_v17 }
 0x18a   : > { %v306_v27 = vadd.f32 %v422_v25, %v299_v26 }
 0x18c   : > { %307 = vst [vmem:[%s229_s18] sm:$0xff] %v306_v27 }
 0x18d   : > { %581 = shalt.err (!%p578_p7)
}
 0x18e   : > { %s582_s15 = scalar_lea.hbm %s321_s27, 128  ;;  %s586_s1 = scalar_lea.hbm %s845_s5, 256 }
 0x18f   : > { %p583_p9 = scmp.ne.s32.totalorder %s321_s27, %s582_s15  ;;  %p587_p2 = scmp.lt.s32.totalorder %s321_s27, %s845_s5 }
 0x190   : > { %p588_p5 = scmp.lt.s32.totalorder %s586_s1, %s582_s15 }
 0x191   : > { %p584_p12 = pnand %p583_p9, %p858_p8 }
 0x192   : > { %p589_p3 = por %p588_p5, %p587_p2 }
 0x193   : > { %p585_p1 = pneg %p584_p12 }
 0x195   : > { %p590_p4 = pnand %p589_p3, %p585_p1 }
 0x197   : > { %593 = shalt.err (!%p590_p4)
}
 0x198   : > { %435 = dma.vmem_to_hbm [thread:$0]  (%p858_p8), %s324_s19, 128, %s321_s27, %s309_s29  }
 0x199 PF: > { %p452_p10 = scmp.ge.s32.totalorder %s654_s26, 2  ;;  %s335_s13 = sand.u32 1, %s634_s21  }
 0x19a   : > { %p859_p11 = scmp.ne.s32.totalorder %s852_s7, 0  ;;  %s336_s9 = scalar_lea.sflag [#allocation7], %s335_s13 }
 0x19c   : > { %p445_p13 = pnand %p452_p10, %p859_p11 }
 0x19e   : > { %p446_p0 = pneg %p445_p13 }
 0x1a0   : > { %629 = dma.done.wait (%p446_p0), %s336_s9, 128  }
 0x1a1   : > { %631 = vsyncadd (%p446_p0), %s336_s9, 4294967168  ;;  %s24_s26 = sadd.s32 1, %s654_s26   ;;  %s860_s30 = sld [smem:[#allocation15_spill]] }
 0x1a2   : > { %p21_p6 = scmp.ge.s32.totalorder %s24_s26, 4   ;;  %s861_s21 = smov %s638_s22 }
 0x1a3   : > { %s862_s22 = smov %s642_s23  ;;  %s863_s23 = smov %s748_s8 }
 0x1a4   : > { %s864_s24 = smov %s650_s25  ;;  %23 = sbr.rel (!%p21_p6) target bundleno = 13 (0xd), region = 86 }
 0x1a7   : > { %s865_s25 = smov %s860_s30 }
 0x1a9   :  { %341 = vsyncpa [#allocation6], 1 }
 0x1aa   :  { %343 = vsyncpa [#allocation6 + $0x1], 1 }
 0x1ab   :  { %344 = vsyncpa [#allocation9], 1 }
 0x1ac   :  { %345 = vsyncpa [#allocation7], 1 }
 0x1ad   :  { %347 = vsyncpa [#allocation7 + $0x1], 1 }

</bundles_post_ra>
